<compile_context>
chip_gen: v7x
topology: tpu7x:2x2x1
jax: 0.10.0
libtpu: 0.0.40
codegen_flags: <defaults>
</compile_context>

<pallas_src>
import functools

import jax
import jax.numpy as jnp
from jax.experimental import pallas as pl
from jax.experimental.pallas import tpu as pltpu


def _dice_sums_kernel(logits_ref, targets_ref, out_ref, *, hw, tile_hw, masked):
    t_idx = pl.program_id(1)

    @pl.when(t_idx == 0)
    def _():
        out_ref[...] = jnp.zeros_like(out_ref)

    x = logits_ref[...].astype(jnp.float32)          # (C, TILE_HW)
    tgt = targets_ref[...]                           # (1, TILE_HW) int32
    c = x.shape[0]

    # one-hot(targets) as a boolean hit-mask via class-iota on the sublane axis
    cls = jax.lax.broadcasted_iota(jnp.int32, (c, tile_hw), 0)
    hit = cls == tgt                                 # (C, TILE_HW)

    if masked:
        # ragged tail: zero out lanes whose global pixel index >= H*W
        pix = jax.lax.broadcasted_iota(jnp.int32, (1, tile_hw), 1) + t_idx * tile_hw
        valid = pix < hw                             # (1, TILE_HW)
        x = jnp.where(valid, x, 0.0)
        hit = jnp.logical_and(hit, valid)

    inter = jnp.sum(jnp.where(hit, x, 0.0), axis=1, keepdims=True)      # (C, 1)
    psum = jnp.sum(x, axis=1, keepdims=True)                            # (C, 1)
    osum = jnp.sum(hit.astype(jnp.float32), axis=1, keepdims=True)      # (C, 1)

    # single stacked accumulate into the VMEM-resident output block
    out_ref[...] += jnp.concatenate([inter, psum + osum], axis=1)       # (C, 2)


def _dice_sums(logits, targets, *, tile_hw=8192):
    """Per-(batch, class) [intersection, union] sums. Returns (B, C, 2) f32."""
    b, c, h, w = logits.shape
    hw = h * w

    # Reshape only (free, no data movement) -- pixels land on the lane axis.
    logits_flat = logits.reshape(b, c, hw)
    targets_flat = targets.reshape(b, 1, hw).astype(jnp.int32)

    tile_hw = max(128, (tile_hw // 128) * 128)            # lane-aligned tile
    tile = min(tile_hw, pl.cdiv(hw, 128) * 128)           # never exceed padded HW
    grid = (b, pl.cdiv(hw, tile))
    masked = (hw % tile) != 0

    kernel = functools.partial(_dice_sums_kernel, hw=hw, tile_hw=tile, masked=masked)
    return pl.pallas_call(
        kernel,
        out_shape=jax.ShapeDtypeStruct((b, c, 2), jnp.float32),
        grid_spec=pltpu.PrefetchScalarGridSpec(
            num_scalar_prefetch=0,
            grid=grid,
            in_specs=[
                pl.BlockSpec((None, c, tile), lambda bi, ti: (bi, 0, ti)),
                pl.BlockSpec((None, 1, tile), lambda bi, ti: (bi, 0, ti)),
            ],
            out_specs=pl.BlockSpec((None, c, 2), lambda bi, ti: (bi, 0, 0)),
        ),
        compiler_params=pltpu.CompilerParams(
            # batch axis splits across TensorCores (v7x megacore); pixel-tile
            # axis is the sequential reduction axis.
            dimension_semantics=("parallel", "arbitrary"),
        ),
    )(logits_flat, targets_flat)


def dice_loss(logits, targets, smooth=1.0, weight=None, *, tile_hw=8192,
              input_dtype=None):
    """DiceLoss.forward: logits [B,C,H,W] (used directly as probs), targets [B,H,W]."""
    if input_dtype is not None:
        # e.g. jnp.bfloat16: halves HBM traffic of the mem-bound reduction;
        # in-kernel accumulation stays f32.
        logits = logits.astype(input_dtype)

    sums = _dice_sums(logits, targets, tile_hw=tile_hw)   # (B, C, 2) f32
    intersection = sums[..., 0]
    union = sums[..., 1]
    dice_score = (2.0 * intersection + smooth) / (union + smooth)
    if weight is not None:
        dice_score = dice_score * jnp.asarray(weight, dtype=dice_score.dtype)
    return jnp.mean(1.0 - dice_score)


def _reference(logits, targets, smooth=1.0, weight=None):
    """Pure-JAX transcription of the PyTorch DiceLoss.forward."""
    num_classes = logits.shape[1]
    probs = logits.astype(jnp.float32)
    onehot = jax.nn.one_hot(targets, num_classes, dtype=jnp.float32)   # [B,H,W,C]
    onehot = jnp.transpose(onehot, (0, 3, 1, 2))                       # [B,C,H,W]
    intersection = jnp.sum(probs * onehot, axis=(2, 3))
    union = jnp.sum(probs, axis=(2, 3)) + jnp.sum(onehot, axis=(2, 3))
    dice_score = (2.0 * intersection + smooth) / (union + smooth)
    if weight is not None:
        dice_score = dice_score * jnp.asarray(weight, dtype=dice_score.dtype)
    return jnp.mean(1.0 - dice_score)


if __name__ == "__main__":
    key = jax.random.PRNGKey(0)
    k1, k2, k3, k4 = jax.random.split(key, 4)

    B, C, H, W = 2, 34, 16, 16
    # The module's docstring says `logits` holds predicted probabilities (its
    # forward uses them directly, no softmax) -> feed softmax'd random scores.
    probs = jax.nn.softmax(jax.random.normal(k1, (B, C, H, W), jnp.float32), axis=1)
    targets = jax.random.randint(k2, (B, H, W), 0, C, dtype=jnp.int32)

    # 1) single-tile path, no class weights
    out = jax.block_until_ready(dice_loss(probs, targets))
    ref = jax.block_until_ready(_reference(probs, targets))
    assert jnp.allclose(out, ref, atol=1e-5, rtol=1e-5), (out, ref)

    # 2) multi-tile accumulation path + per-class weights
    weight = jnp.linspace(0.5, 1.5, C, dtype=jnp.float32)
    out_w = jax.block_until_ready(dice_loss(probs, targets, weight=weight, tile_hw=128))
    ref_w = jax.block_until_ready(_reference(probs, targets, weight=weight))
    assert jnp.allclose(out_w, ref_w, atol=1e-5, rtol=1e-5), (out_w, ref_w)

    # 3) ragged H*W (not a multiple of the 128-lane tile) -> tail-mask path
    H2, W2 = 12, 12
    probs2 = jax.nn.softmax(jax.random.normal(k3, (B, C, H2, W2), jnp.float32), axis=1)
    targets2 = jax.random.randint(k4, (B, H2, W2), 0, C, dtype=jnp.int32)
    out2 = jax.block_until_ready(dice_loss(probs2, targets2, tile_hw=128))
    ref2 = jax.block_until_ready(_reference(probs2, targets2))
    assert jnp.allclose(out2, ref2, atol=1e-5, rtol=1e-5), (out2, ref2)

    print("KERNEL_OK")
</pallas_src>

<mosaic_0001>
module attributes {stable_mosaic.version = 11 : i64} {
  func.func @_dice_sums_kernel(%arg0: i32, %arg1: i32, %arg2: memref<1x34x256xf32, #tpu.memory_space<vmem>>, %arg3: memref<1x1x256xi32, #tpu.memory_space<vmem>>, %arg4: memref<1x34x2xf32, #tpu.memory_space<vmem>>) attributes {dimension_semantics = [#tpu.dimension_semantics<parallel>, #tpu.dimension_semantics<arbitrary>], iteration_bounds = array<i64: 2, 1>, scalar_prefetch = 0 : i64, scratch_operands = 0 : i64, tpu.core_type = #tpu.core_type<tc>, window_params = [{transform_indices = @transform_0, window_bounds = array<i64: 1, 34, 256>}, {transform_indices = @transform_1, window_bounds = array<i64: 1, 1, 256>}, {transform_indices = @transform_2, window_bounds = array<i64: 1, 34, 2>}]} {
    %c0_i32 = arith.constant 0 : i32
    %0 = arith.cmpi eq, %arg1, %c0_i32 : i32
    %1 = arith.extui %0 : i1 to i32
    %c0_i32_0 = arith.constant 0 : i32
    %2 = arith.cmpi ne, %1, %c0_i32_0 : i32
    scf.if %2 {
      %cst_15 = arith.constant 0.000000e+00 : f32
      %28 = vector.broadcast %cst_15 : f32 to vector<34x2xf32>
      %c0_16 = arith.constant 0 : index
      %c0_17 = arith.constant 0 : index
      %c0_18 = arith.constant 0 : index
      %29 = vector.load %arg4[%c0_16, %c0_17, %c0_18] : memref<1x34x2xf32, #tpu.memory_space<vmem>>, vector<1x34x2xf32>
      %30 = vector.shape_cast %29 : vector<1x34x2xf32> to vector<34x2xf32>
      %31 = vector.shape_cast %28 : vector<34x2xf32> to vector<1x34x2xf32>
      tpu.vector_store %arg4[%c0_16, %c0_17, %c0_18], %31 {strides = array<i32>} : memref<1x34x2xf32, #tpu.memory_space<vmem>>, vector<1x34x2xf32>,
    } else {
    }
    %c0 = arith.constant 0 : index
    %c0_1 = arith.constant 0 : index
    %c0_2 = arith.constant 0 : index
    %3 = vector.load %arg2[%c0, %c0_1, %c0_2] : memref<1x34x256xf32, #tpu.memory_space<vmem>>, vector<1x34x256xf32>
    %4 = vector.shape_cast %3 : vector<1x34x256xf32> to vector<34x256xf32>
    %c0_3 = arith.constant 0 : index
    %c0_4 = arith.constant 0 : index
    %c0_5 = arith.constant 0 : index
    %5 = vector.load %arg3[%c0_3, %c0_4, %c0_5] : memref<1x1x256xi32, #tpu.memory_space<vmem>>, vector<1x1x256xi32>
    %6 = vector.shape_cast %5 : vector<1x1x256xi32> to vector<1x256xi32>
    %7 = tpu.iota {dimensions = array<i32: 0>} : vector<34x256xi32>
    %8 = vector.broadcast %6 : vector<1x256xi32> to vector<34x256xi32>
    %9 = arith.cmpi eq, %7, %8 : vector<34x256xi32>
    %cst = arith.constant 0.000000e+00 : f32
    %10 = vector.broadcast %cst : f32 to vector<34x256xf32>
    %11 = arith.select %9, %4, %10 : vector<34x256xi1>, vector<34x256xf32>
    %cst_6 = arith.constant dense<0.000000e+00> : vector<34xf32>
    %12 = vector.multi_reduction <add>, %11, %cst_6 [1] : vector<34x256xf32> to vector<34xf32>
    %13 = vector.shape_cast %12 : vector<34xf32> to vector<34x1xf32>
    %cst_7 = arith.constant dense<0.000000e+00> : vector<34xf32>
    %14 = vector.multi_reduction <add>, %4, %cst_7 [1] : vector<34x256xf32> to vector<34xf32>
    %15 = vector.shape_cast %14 : vector<34xf32> to vector<34x1xf32>
    %16 = arith.extui %9 : vector<34x256xi1> to vector<34x256xi32>
    %17 = arith.sitofp %16 : vector<34x256xi32> to vector<34x256xf32>
    %cst_8 = arith.constant dense<0.000000e+00> : vector<34xf32>
    %18 = vector.multi_reduction <add>, %17, %cst_8 [1] : vector<34x256xf32> to vector<34xf32>
    %19 = vector.shape_cast %18 : vector<34xf32> to vector<34x1xf32>
    %c0_9 = arith.constant 0 : index
    %c0_10 = arith.constant 0 : index
    %c0_11 = arith.constant 0 : index
    %20 = vector.load %arg4[%c0_9, %c0_10, %c0_11] : memref<1x34x2xf32, #tpu.memory_space<vmem>>, vector<1x34x2xf32>
    %21 = vector.shape_cast %20 : vector<1x34x2xf32> to vector<34x2xf32>
    %22 = arith.addf %15, %19 : vector<34x1xf32>
    %23 = tpu.concatenate %13, %22 in 1 : vector<34x1xf32>, vector<34x1xf32> -> vector<34x2xf32>
    %24 = arith.addf %21, %23 : vector<34x2xf32>
    %c0_12 = arith.constant 0 : index
    %c0_13 = arith.constant 0 : index
    %c0_14 = arith.constant 0 : index
    %25 = vector.load %arg4[%c0_12, %c0_13, %c0_14] : memref<1x34x2xf32, #tpu.memory_space<vmem>>, vector<1x34x2xf32>
    %26 = vector.shape_cast %25 : vector<1x34x2xf32> to vector<34x2xf32>
    %27 = vector.shape_cast %24 : vector<34x2xf32> to vector<1x34x2xf32>
    tpu.vector_store %arg4[%c0_12, %c0_13, %c0_14], %27 {strides = array<i32>} : memref<1x34x2xf32, #tpu.memory_space<vmem>>, vector<1x34x2xf32>,
    return
  }
  func.func @transform_0(%arg0: i32, %arg1: i32) -> (i32, i32, i32) {
    %c0_i32 = arith.constant 0 : i32
    %c0_i32_0 = arith.constant 0 : i32
    return %arg0, %c0_i32, %arg1 : i32, i32, i32
  }
  func.func @transform_1(%arg0: i32, %arg1: i32) -> (i32, i32, i32) {
    %c0_i32 = arith.constant 0 : i32
    %c0_i32_0 = arith.constant 0 : i32
    return %arg0, %c0_i32, %arg1 : i32, i32, i32
  }
  func.func @transform_2(%arg0: i32, %arg1: i32) -> (i32, i32, i32) {
    %c0_i32 = arith.constant 0 : i32
    %c0_i32_0 = arith.constant 0 : i32
    %c0_i32_1 = arith.constant 0 : i32
    return %arg0, %c0_i32, %c0_i32_0 : i32, i32, i32
  }
}

</mosaic_0001>

<bundles_post_ra>
// kernel: tpu_custom_call.1
= control target key start
LH: loop header
LB: loop body
LE: loop exit
PB: predicated region body
PF: predicated region fallthrough
CT: control target
= control target key end

     0   :  { %s532_s9 = smov 0   ;;  %s534_s10 = smov 0   ;;  %s710_s0 = inlined_call_operand.vmem [shape: f32[2,34,256], index: 0, kind: input, shape index: {}]   ;;  %s711_s1 = inlined_call_operand.vmem [shape: s32[2,1,256], index: 1, kind: input, shape index: {}]   ;;  %s712_s2 = inlined_call_operand.vmem [shape: f32[2,34,2], index: 2, kind: output, shape index: {}]  }
   0x1   :  { %s536_s11 = smov 0  }
   0x2 LB: > { %s24_s12 = sadd.s32 1, %s510_s10  ;;  %p449_p0 = scmp.ge.s32.totalorder %s514_s11, 1  ;;  %s514_s11 = sphi %s536_s11, %s12_s11   ;;  %s510_s10 = sphi %s534_s10, %s714_s10   ;;  %s506_s9 = sphi %s532_s9, %s713_s9  }
   0x3   : > { %p26_p1 = scmp.ge.s32.totalorder %s24_s12, 2  ;;  %p147_p2 = scmp.lt.s32.totalorder %s514_s11, 3 }
   0x5   : > { %s716_s12 = smov (%p26_p1, %s24_s12), 0  ;;  %p148_p3 = pnand %p449_p0, %p147_p2 }
   0x6   : > { %p182_p4 = scmp.lt.s32.totalorder (!%p148_p3), %s506_s9, 1  ;;  %v227_v0 = vlaneseq (!%p148_p3)  ;;  %vm273_vm2 = vcmask (!%p148_p3), 1041408   ;;  %v516_v23 = vmov (!%p148_p3), 0.0   ;;  %vm209_vm11 = vcmask (!%p148_p3), 15360  }
   0x7   : > { %151 = sbr.rel (%p148_p3) target bundleno = 196 (0xc4), region = 28  ;;  %vm214_vm12 = vcmask (!%p148_p3), 9216   ;;  %vm343_vm13 = vcmask (!%p148_p3), 7168  }
   0x8   : > { %v552_v1 = vshrl.u32 (!%p148_p3), %v227_v0, 7 }
   0xa   : > { %v235_v2 = vsub.s32 (!%p148_p3), 0, %v552_v1  ;;  %v239_v3 = vsub.s32 (!%p148_p3), 1, %v552_v1  ;;  %v573_v10 = vadd.s32 (!%p148_p3), 16, %v552_v1  ;;  %v229_v20 = vadd.s32 (!%p148_p3), 8, %v552_v1 }
   0xb   : > { %v232_v21 = vadd.s32 (!%p148_p3), 32, %v552_v1  ;;  %v231_v29 = vadd.s32 (!%p148_p3), 24, %v552_v1 }
   0xe   : > { %s718_s9 = smov (!%p182_p4, %s506_s9), 1 }
   0xf   : > { %s465_s13 = smul.u32 80, %s718_s9  ;;  %s451_s14 = sshll.u32 %s718_s9, 1 }
  0x10   : > { %s198_s17 = scalar_lea.vmem %s711_s1, %s451_s14  ;;  %s466_s21 = smul.u32 40, %s718_s9 }
  0x11   : > { %s189_s20 = scalar_lea.vmem %s710_s0, %s465_s13  ;;  %v226_v4 = vld [vmem:[%s198_s17] sm:$0x3] }
  0x12   : > { %v564_v5 = vld [vmem:[%s189_s20 + $0x20] sm:$0xff]  ;;  %v566_v6 = vld [vmem:[%s189_s20 + $0x28] sm:$0xff]  ;;  %v568_v7 = vrot.slane %v226_v4, %v235_v2  ;;  %v570_v8 = vrot.slane %v226_v4, %v239_v3  ;;  %v222_v13 = vld [vmem:[%s189_s20 + $0x30] sm:$0xff]  ;;  %s664_s24 = scalar_lea.vmem %s712_s2, %s466_s21 }
  0x13   : > { %v216_v9 = vld [vmem:[%s189_s20] sm:$0xff]  ;;  %v285_v11 = vadd.f32 %v566_v6, %v564_v5  ;;  %v217_v12 = vld [vmem:[%s189_s20 + $0x8] sm:$0xff]  ;;  %v223_v14 = vld [vmem:[%s189_s20 + $0x38] sm:$0xff]  ;;  %211 = vst.msk [vmem:[%s664_s24 + $0x8] sm:$0xff] %vm209_vm11, %v516_v23 }
  0x14   : > { %vm241_vm0 = vcmp.eq.s32.totalorder %v552_v1, %v568_v7  ;;  %vm242_vm1 = vcmp.eq.s32.totalorder %v552_v1, %v570_v8  ;;  %v218_v15 = vld [vmem:[%s189_s20 + $0x10] sm:$0xff]  ;;  %v219_v16 = vld [vmem:[%s189_s20 + $0x18] sm:$0xff]  ;;  %v279_v17 = vadd.f32 %v217_v12, %v216_v9  ;;  %v224_v18 = vld [vmem:[%s189_s20 + $0x40] sm:$0x3]  ;;  %v288_v22 = vadd.f32 %v223_v14, %v222_v13  ;;  %210 = vst.msk [vmem:[%s664_s24] sm:$0xff] %vm209_vm11, %v516_v23 }
  0x15   : > { %286 = vadd.xlane.f32.xlu1 %v285_v11  ;;  %v225_v19 = vld [vmem:[%s189_s20 + $0x48] sm:$0x3]  ;;  %v453_v24 = vsel %vm241_vm0, 1.0, %v516_v23  ;;  %vm245_vm3 = vcmp.eq.s32.totalorder %v573_v10, %v568_v7  ;;  %vm246_vm4 = vcmp.eq.s32.totalorder %v573_v10, %v570_v8  ;;  %v282_v25 = vadd.f32 %v219_v16, %v218_v15  ;;  %212 = vst.msk [vmem:[%s664_s24 + $0x10] sm:$0xff] %vm209_vm11, %v516_v23 }
  0x16   : > { %280 = vadd.xlane.f32.xlu0 %v279_v17  ;;  %v454_v26 = vsel %vm242_vm1, 1.0, %v516_v23  ;;  %v291_v27 = vsel %vm273_vm2, %v224_v18, 0.0  ;;  %v292_v28 = vsel %vm273_vm2, %v225_v19, 0.0  ;;  %vm243_vm5 = vcmp.eq.s32.totalorder %v229_v20, %v568_v7  ;;  %213 = vst.msk [vmem:[%s664_s24 + $0x18] sm:$0xff] %vm209_vm11, %v516_v23 }
  0x17   : > { %v316_v30 = vadd.f32 %v454_v26, %v453_v24  ;;  %vm244_vm6 = vcmp.eq.s32.totalorder %v229_v20, %v570_v8  ;;  %vm249_vm7 = vcmp.eq.s32.totalorder %v232_v21, %v568_v7  ;;  %v457_v31 = vsel %vm245_vm3, 1.0, %v516_v23  ;;  %215 = vst.msk [vmem:[%s664_s24 + $0x20] sm:$0x3] %vm214_vm12, %v516_v23 }
  0x18   : > { %v458_v32 = vsel %vm246_vm4, 1.0, %v516_v23  ;;  %vm250_vm8 = vcmp.eq.s32.totalorder %v232_v21, %v570_v8  ;;  %v293_v33 = vadd.f32 %v292_v28, %v291_v27  ;;  %v461_v34 = vsel %vm249_vm7, 1.0, %v516_v23 }
  0x19   : > { %289 = vadd.xlane.f32.xlu1 %v288_v22  ;;  %v462_v35 = vsel %vm250_vm8, 1.0, %v516_v23  ;;  %v455_v36 = vsel %vm243_vm5, 1.0, %v516_v23  ;;  %v456_v37 = vsel %vm244_vm6, 1.0, %v516_v23  ;;  %v322_v38 = vadd.f32 %v458_v32, %v457_v31 }
  0x1a   : > { %283 = vadd.xlane.f32.xlu0 %v282_v25  ;;  %vm247_vm9 = vcmp.eq.s32.totalorder %v231_v29, %v568_v7  ;;  %vm248_vm10 = vcmp.eq.s32.totalorder %v231_v29, %v570_v8  ;;  %v328_v39 = vsel %vm273_vm2, %v461_v34, 0.0  ;;  %v329_v40 = vsel %vm273_vm2, %v462_v35, 0.0  ;;  %v334_v10 = vld [vmem:[%s664_s24 + $0x8] sm:$0xff] }
  0x1b   : > { %v319_v41 = vadd.f32 %v456_v37, %v455_v36  ;;  %v459_v42 = vsel %vm247_vm9, 1.0, %v516_v23  ;;  %v460_v43 = vsel %vm248_vm10, 1.0, %v516_v23  ;;  %v330_v44 = vadd.f32 %v329_v40, %v328_v39 }
  0x1c   : > { %v253_v45 = vsel %vm243_vm5, %v218_v15, 0.0  ;;  %v254_v46 = vsel %vm244_vm6, %v219_v16, 0.0  ;;  %v325_v47 = vadd.f32 %v460_v43, %v459_v42  ;;  %v252_v48 = vsel %vm242_vm1, %v217_v12, 0.0  ;;  %v335_v24 = vld [vmem:[%s664_s24 + $0x10] sm:$0xff] }
  0x1d   : > { %317 = vadd.xlane.f32.xlu1 %v316_v30  ;;  %v251_v49 = vsel %vm241_vm0, %v216_v9, 0.0  ;;  %v264_v50 = vadd.f32 %v254_v46, %v253_v45  ;;  %v257_v51 = vsel %vm247_vm9, %v222_v13, 0.0  ;;  %v258_v52 = vsel %vm248_vm10, %v223_v14, 0.0  ;;  %v333_v14 = vld [vmem:[%s664_s24] sm:$0xff] }
  0x1e   : > { %294 = vadd.xlane.f32.xlu0 %v293_v33  ;;  %v261_v53 = vadd.f32 %v252_v48, %v251_v49  ;;  %v256_v54 = vsel %vm246_vm4, %v566_v6, 0.0  ;;  %v255_v55 = vsel %vm245_vm3, %v564_v5, 0.0  ;;  %v270_v56 = vadd.f32 %v258_v52, %v257_v51  ;;  %v337_v30 = vld [vmem:[%s664_s24 + $0x20] sm:$0x3] }
  0x1f   : > { %v259_v57 = vsel %vm249_vm7, %v224_v18, 0.0  ;;  %v260_v58 = vsel %vm250_vm8, %v225_v19, 0.0  ;;  %v267_v59 = vadd.f32 %v256_v54, %v255_v55  ;;  %v336_v19 = vld [vmem:[%s664_s24 + $0x18] sm:$0xff] }
  0x20   : > { %v274_v60 = vsel %vm273_vm2, %v259_v57, 0.0  ;;  %v275_v61 = vsel %vm273_vm2, %v260_v58, 0.0 }
  0x21   : > { %323 = vadd.xlane.f32.xlu1 %v322_v38  ;;  %v276_v62 = vadd.f32 %v275_v61, %v274_v60 }
  0x22   : > { %320 = vadd.xlane.f32.xlu0 %v319_v41 }
  0x25   : > { %331 = vadd.xlane.f32.xlu1 %v330_v44 }
  0x26   : > { %326 = vadd.xlane.f32.xlu0 %v325_v47 }
  0x29   : > { %265 = vadd.xlane.f32.xlu1 %v264_v50 }
  0x2a   : > { %262 = vadd.xlane.f32.xlu0 %v261_v53 }
  0x2d   : > { %271 = vadd.xlane.f32.xlu1 %v270_v56 }
  0x2e   : > { %268 = vadd.xlane.f32.xlu0 %v267_v59 }
  0x32   : > { %277 = vadd.xlane.f32.xlu0 %v276_v62 }
  0xa2   : > { %v287_v63 = vpop.xlane.xlu1 %286 }
  0xa3   : > { %v281_v0 = vpop.xlane.xlu0 %280 }
  0xa6   : > { %v290_v1 = vpop.xlane.xlu1 %289 }
  0xa7   : > { %v284_v2 = vpop.xlane.xlu0 %283 }
  0xaa   : > { %v318_v3 = vpop.xlane.xlu1 %317 }
  0xab   : > { %v295_v4 = vpop.xlane.xlu0 %294  ;;  %v338_v12 = vadd.f32 %v318_v3, %v281_v0 }
  0xae   : > { %v324_v5 = vpop.xlane.xlu1 %323 }
  0xaf   : > { %v321_v6 = vpop.xlane.xlu0 %320  ;;  %v340_v22 = vadd.f32 %v324_v5, %v287_v63 }
  0xb0   : > { %v339_v9 = vadd.f32 %v321_v6, %v284_v2 }
  0xb2   : > { %v332_v7 = vpop.xlane.xlu1 %331 }
  0xb3   : > { %v327_v8 = vpop.xlane.xlu0 %326  ;;  %v342_v29 = vadd.f32 %v332_v7, %v295_v4 }
  0xb4   : > { %v341_v17 = vadd.f32 %v327_v8, %v290_v1 }
  0xb6   : > { %v266_v11 = vpop.xlane.xlu1 %265 }
  0xb7   : > { %v345_v13 = vsel %vm343_vm13, %v266_v11, %v339_v9  ;;  %v263_v16 = vpop.xlane.xlu0 %262 }
  0xb8   : > { %v350_v15 = vadd.f32 %v345_v13, %v334_v10  ;;  %v344_v18 = vsel %vm343_vm13, %v263_v16, %v338_v12 }
  0xb9   : > { %v349_v20 = vadd.f32 %v344_v18, %v333_v14 }
  0xba   : > { %356 = vst.msk [vmem:[%s664_s24 + $0x8] sm:$0xff] %vm209_vm11, %v350_v15  ;;  %v272_v21 = vpop.xlane.xlu1 %271 }
  0xbb   : > { %v347_v23 = vsel %vm343_vm13, %v272_v21, %v341_v17  ;;  %355 = vst.msk [vmem:[%s664_s24] sm:$0xff] %vm209_vm11, %v349_v20  ;;  %v269_v26 = vpop.xlane.xlu0 %268 }
  0xbc   : > { %v352_v25 = vadd.f32 %v347_v23, %v336_v19  ;;  %v346_v27 = vsel %vm343_vm13, %v269_v26, %v340_v22 }
  0xbd   : > { %v351_v28 = vadd.f32 %v346_v27, %v335_v24 }
  0xbe   : > { %358 = vst.msk [vmem:[%s664_s24 + $0x18] sm:$0xff] %vm209_vm11, %v352_v25 }
  0xbf   : > { %357 = vst.msk [vmem:[%s664_s24 + $0x10] sm:$0xff] %vm209_vm11, %v351_v28  ;;  %v278_v31 = vpop.xlane.xlu0 %277 }
  0xc0   : > { %v348_v32 = vsel %vm343_vm13, %v278_v31, %v342_v29 }
  0xc1   : > { %v353_v33 = vadd.f32 %v348_v32, %v337_v30 }
  0xc3   : > { %360 = vst.msk [vmem:[%s664_s24 + $0x20] sm:$0x3] %vm214_vm12, %v353_v33 }
  0xc4 PF: > { %s12_s11 = sadd.s32 1, %s514_s11   ;;  %s713_s9 = smov %s510_s10 }
  0xc5   : > { %p9_p5 = scmp.ge.s32.totalorder %s12_s11, 4   ;;  %s714_s10 = smov %s716_s12 }
  0xc7   :  { %11 = sbr.rel (!%p9_p5) target bundleno = 2 (0x2), region = 65 }

</bundles_post_ra>
